<compile_context>
chip_gen: v7x
topology: tpu7x:2x2x1
jax: 0.10.0
libtpu: 0.0.40
codegen_flags: <defaults>
</compile_context>

<pallas_src>
from functools import partial

import numpy as np
import jax
import jax.numpy as jnp
from jax.experimental import pallas as pl
from jax.experimental.pallas import tpu as pltpu


def _make_pe_table(d_model: int, max_len: int) -> jnp.ndarray:
    """Deterministic sinusoidal positional-encoding table, matching the torch code."""
    pe = np.zeros((max_len, d_model), dtype=np.float32)
    position = np.arange(0, max_len, dtype=np.float32)[:, None]          # (max_len, 1)
    div_term = np.exp(
        np.arange(0, d_model, 2, dtype=np.float32) * (-np.log(10000.0) / d_model)
    )                                                                    # (ceil(D/2),)
    pe[:, 0::2] = np.sin(position * div_term)
    pe[:, 1::2] = np.cos(position * div_term[: pe[:, 1::2].shape[1]])
    return jnp.asarray(pe)                                               # (max_len, D)


# ----------------------------- kernels ------------------------------------ #

def _pos_enc_kernel(x_ref, pe_ref, o_ref):
    # x_ref: (RB, TC), pe_ref: (1, TC) -> broadcast add over rows.
    o_ref[...] = x_ref[...] + pe_ref[...]


def _pos_enc_dropout_kernel(x_ref, pe_ref, u_ref, o_ref, *, p, scale):
    # u_ref holds uniform [0,1) samples; keep prob = 1 - p, inverted dropout.
    y = x_ref[...] + pe_ref[...]
    keep = u_ref[...] >= jnp.float32(p)
    o_ref[...] = jnp.where(keep, y * jnp.asarray(scale, y.dtype), jnp.zeros_like(y))


# ----------------------------- tiling helpers ------------------------------ #

def _divisor_tile(dim: int, quantum: int, max_tile: int) -> int:
    """Largest divisor of `dim` that is a multiple of `quantum` and <= max_tile.

    Falls back to the smallest such divisor, or the full dim if `quantum`
    does not divide `dim` (full-extent blocks are always legal)."""
    if dim % quantum != 0:
        return dim
    candidates = [t for t in range(quantum, dim + 1, quantum) if dim % t == 0]
    fits = [t for t in candidates if t <= max_tile]
    return max(fits) if fits else min(candidates)


# ----------------------------- wrapper ------------------------------------- #

def positional_encoding(x, pe_table, *, p=0.1, training=False, rng_key=None):
    """x: (B, S, D) float array. pe_table: (max_len, D). Returns (B, S, D)."""
    B, S, D = x.shape
    dtype = x.dtype

    p = float(p)
    if training and p >= 1.0:
        # Degenerate: everything dropped.
        return jnp.zeros_like(x)
    use_dropout = training and p > 0.0

    # Lane-dense 2-D views: the add/dropout are elementwise, so flatten (S, D).
    rows, cols = B, S * D
    x2 = x.reshape(rows, cols)
    pe2 = pe_table[:S, :].astype(dtype).reshape(1, cols)   # matches pe[:, :x.size(1)]

    itemsize = jnp.dtype(dtype).itemsize
    target_bytes = 2 * 1024 * 1024                          # ~2 MiB x-block
    tc = _divisor_tile(cols, 128, max(128, target_bytes // (8 * itemsize)))
    max_rows = max(1, target_bytes // (tc * itemsize))
    rb = _divisor_tile(rows, 8, max_rows)

    n_col_tiles = cols // tc
    n_row_tiles = rows // rb

    # Grid: column tiles outer, row tiles inner -> pe block index is constant
    # across the inner axis, so the shared pe slice is not re-DMA'd per row tile.
    grid = (n_col_tiles, n_row_tiles)
    x_spec = pl.BlockSpec((rb, tc), lambda c, r: (r, c))
    pe_spec = pl.BlockSpec((1, tc), lambda c, r: (0, c))
    out_spec = pl.BlockSpec((rb, tc), lambda c, r: (r, c))

    compiler_params = pltpu.CompilerParams(
        dimension_semantics=("parallel", "parallel"),
        vmem_limit_bytes=32 * 1024 * 1024,
    )

    if use_dropout:
        if rng_key is None:
            rng_key = jax.random.PRNGKey(0)
        # TODO(synk): randomness cannot bit-match torch's dropout RNG; semantics
        # (Bernoulli keep-prob 1-p, scale by 1/(1-p)) are reproduced.
        u = jax.random.uniform(rng_key, (rows, cols), dtype=jnp.float32)
        kernel = partial(_pos_enc_dropout_kernel, p=p, scale=1.0 / (1.0 - p))
        out2 = pl.pallas_call(
            kernel,
            out_shape=jax.ShapeDtypeStruct((rows, cols), dtype),
            grid=grid,
            in_specs=[x_spec, pe_spec, pl.BlockSpec((rb, tc), lambda c, r: (r, c))],
            out_specs=out_spec,
            compiler_params=compiler_params,
        )(x2, pe2, u)
    else:
        out2 = pl.pallas_call(
            _pos_enc_kernel,
            out_shape=jax.ShapeDtypeStruct((rows, cols), dtype),
            grid=grid,
            in_specs=[x_spec, pe_spec],
            out_specs=out_spec,
            compiler_params=compiler_params,
        )(x2, pe2)

    return out2.reshape(B, S, D)


# ----------------------------- demo / checks ------------------------------- #

if __name__ == "__main__":
    B, S, D = 2, 8, 32
    MAX_LEN = 5000
    P = 0.1

    key = jax.random.PRNGKey(0)
    k_x, k_drop = jax.random.split(key)
    x = jax.random.normal(k_x, (B, S, D), dtype=jnp.float32)

    pe_table = _make_pe_table(d_model=D, max_len=MAX_LEN)

    # Eval-mode forward (dropout = identity), deterministic.
    out = positional_encoding(x, pe_table, p=P, training=False)
    out = jax.block_until_ready(out)

    ref = x + pe_table[None, :S, :]
    assert out.shape == (B, S, D)
    assert jnp.allclose(out, ref, atol=1e-5), "eval-path mismatch vs reference"

    # Training/dropout path: entries are either 0 or (x + pe) / (1 - p).
    out_train = positional_encoding(x, pe_table, p=P, training=True, rng_key=k_drop)
    out_train = jax.block_until_ready(out_train)
    assert out_train.shape == (B, S, D)
    kept = out_train != 0.0
    scaled_ref = ref / (1.0 - P)
    assert jnp.allclose(jnp.where(kept, out_train, scaled_ref), scaled_ref, atol=1e-5), \
        "training-path kept values mismatch"

    print("KERNEL_OK")
</pallas_src>

<mosaic_0001>
module attributes {stable_mosaic.version = 11 : i64} {
  func.func @_pos_enc_kernel(%arg0: i32, %arg1: i32, %arg2: memref<2x256xf32, #tpu.memory_space<vmem>>, %arg3: memref<1x256xf32, #tpu.memory_space<vmem>>, %arg4: memref<2x256xf32, #tpu.memory_space<vmem>>) attributes {dimension_semantics = [#tpu.dimension_semantics<parallel>, #tpu.dimension_semantics<parallel>], iteration_bounds = array<i64: 1, 1>, scalar_prefetch = 0 : i64, scratch_operands = 0 : i64, tpu.core_type = #tpu.core_type<tc>, window_params = [{transform_indices = @transform_0, window_bounds = array<i64: 2, 256>}, {transform_indices = @transform_1, window_bounds = array<i64: 1, 256>}, {transform_indices = @transform_2, window_bounds = array<i64: 2, 256>}]} {
    %c0 = arith.constant 0 : index
    %c0_0 = arith.constant 0 : index
    %0 = vector.load %arg2[%c0, %c0_0] : memref<2x256xf32, #tpu.memory_space<vmem>>, vector<2x256xf32>
    %c0_1 = arith.constant 0 : index
    %c0_2 = arith.constant 0 : index
    %1 = vector.load %arg3[%c0_1, %c0_2] : memref<1x256xf32, #tpu.memory_space<vmem>>, vector<1x256xf32>
    %2 = vector.broadcast %1 : vector<1x256xf32> to vector<2x256xf32>
    %3 = arith.addf %0, %2 : vector<2x256xf32>
    %c0_3 = arith.constant 0 : index
    %c0_4 = arith.constant 0 : index
    %4 = vector.load %arg4[%c0_3, %c0_4] : memref<2x256xf32, #tpu.memory_space<vmem>>, vector<2x256xf32>
    tpu.vector_store %arg4[%c0_3, %c0_4], %3 {strides = array<i32>} : memref<2x256xf32, #tpu.memory_space<vmem>>, vector<2x256xf32>,
    return
  }
  func.func @transform_0(%arg0: i32, %arg1: i32) -> (i32, i32) {
    %c0_i32 = arith.constant 0 : i32
    return %arg1, %arg0 : i32, i32
  }
  func.func @transform_1(%arg0: i32, %arg1: i32) -> (i32, i32) {
    %c0_i32 = arith.constant 0 : i32
    %c0_i32_0 = arith.constant 0 : i32
    return %c0_i32, %arg0 : i32, i32
  }
  func.func @transform_2(%arg0: i32, %arg1: i32) -> (i32, i32) {
    %c0_i32 = arith.constant 0 : i32
    return %arg1, %arg0 : i32, i32
  }
}

</mosaic_0001>

<bundles_post_ra>
// kernel: tpu_custom_call.1
= control target key start
LH: loop header
LB: loop body
LE: loop exit
PB: predicated region body
PF: predicated region fallthrough
CT: control target
= control target key end

     0   :  { %7 = vsyncpa [#allocation3], 0  ;;  %s157_s0 = inlined_call_operand.hbm [shape: f32[2,256], index: 0, kind: input, shape index: {}]   ;;  %s158_s1 = inlined_call_operand.vmem [shape: f32[1,256], index: 1, kind: input, shape index: {}]   ;;  %s159_s2 = inlined_call_operand.hbm [shape: f32[2,256], index: 2, kind: output, shape index: {}]  }
   0x1   :  { %8 = vsyncpa [#allocation4], 0  ;;  %s112_s9 = smov [#allocation2]   ;;  %s64_s13 = scalar_lea.hbm %s157_s0, 64 }
   0x2   :  { %s15_s10 = sshll.u32 %s112_s9, 4  ;;  %p65_p0 = scmp.ne.s32.totalorder %s157_s0, %s64_s13  ;;  %s16_s10 = int_to_ptr.vmem [resolvable:$true] %s15_s10 }
   0x3   :  { %p68_p1 = scmp.lt.u32.totalorder %s64_s13, %s157_s0 }
   0x5   :  { %p70_p2 = pnand %p68_p1, %p65_p0 }
   0x7   :  { %73 = shalt.err (!%p70_p2)
}
   0x8   :  { %s74_s18 = scalar_lea.vmem %s16_s10, 64  ;;  %p79_p4 = scmp.lt.s32.totalorder %s16_s10, %s16_s10 }
   0x9   :  { %p75_p3 = scmp.ne.s32.totalorder %s16_s10, %s74_s18  ;;  %p80_p5 = scmp.lt.s32.totalorder %s74_s18, %s74_s18 }
   0xb   :  { %p81_p6 = por %p80_p5, %p79_p4 }
   0xd   :  { %p82_p7 = pnand %p81_p6, %p75_p3 }
   0xf   :  { %85 = shalt.err (!%p82_p7)
}
  0x10   :  { %18 = dma.hbm_to_vmem [thread:$0]  %s157_s0, 64, %s16_s10, [#allocation3]  }
  0x11   :  { %108 = dma.done.wait [#allocation3], 64  }
  0x12   :  { %109 = vsyncadd [#allocation3], 4294967232  ;;  %v27_v0 = vlaneseq  ;;  %v113_v1 = vmov 1983009808   ;;  %v25_v7 = vld [vmem:[%s158_s1] sm:$0x3] }
  0x13   :  { %v37_v2 = vunpack.c.l.s4 %v113_v1  ;;  %v24_v12 = vld [vmem:[#allocation2] sm:$0xf]  ;;  %s114_s23 = smov [#allocation5]  }
  0x14   :  { %v28_v3 = vshrl.u32 %v27_v0, 7  ;;  %s52_s0 = sshll.u32 %s114_s23, 4  ;;  %s53_s0 = int_to_ptr.vmem [resolvable:$true] %s52_s0 }
  0x15   :  { %v38_v6 = vunpack.c.0.s8 %v37_v2  ;;  %s86_s24 = scalar_lea.vmem %s53_s0, 64  ;;  %p91_p9 = scmp.lt.s32.totalorder %s53_s0, %s53_s0 }
  0x16   :  { %v29_v4 = vsub.s32 0, %v28_v3  ;;  %v33_v5 = vsub.s32 1, %v28_v3  ;;  %p87_p8 = scmp.ne.s32.totalorder %s53_s0, %s86_s24  ;;  %p92_p10 = scmp.lt.s32.totalorder %s86_s24, %s86_s24 }
  0x17   :  { %v41_v10 = vsub.s32 %v38_v6, %v28_v3 }
  0x18   :  { %v30_v8 = vrot.slane %v25_v7, %v29_v4  ;;  %v34_v9 = vrot.slane %v25_v7, %v33_v5  ;;  %p93_p11 = por %p92_p10, %p91_p9 }
  0x1a   :  { %v35_v11 = vcombine.low %v30_v8, %v34_v9  ;;  %p94_p12 = pnand %p93_p11, %p87_p8 }
  0x1c   :  { %v42_v13 = vrot.slane %v35_v11, %v41_v10 }
  0x1e   :  { %v44_v14 = vadd.f32 %v42_v13, %v24_v12 }
  0x20   :  { %45 = vst [vmem:[#allocation5] sm:$0xf] %v44_v14 }
  0x21   :  { %97 = shalt.err (!%p94_p12)
}
  0x22   :  { %s98_s26 = scalar_lea.hbm %s159_s2, 64 }
  0x23   :  { %p99_p13 = scmp.ne.s32.totalorder %s159_s2, %s98_s26  ;;  %p102_p0 = scmp.lt.u32.totalorder %s98_s26, %s159_s2 }
  0x25   :  { %p104_p1 = pnand %p102_p0, %p99_p13 }
  0x27   :  { %107 = shalt.err (!%p104_p1)
}
  0x28   :  { %55 = dma.vmem_to_hbm [thread:$0]  %s53_s0, 64, %s159_s2, [#allocation4]  }
  0x29   :  { %110 = dma.done.wait [#allocation4], 64  }
  0x2a   :  { %111 = vsyncadd [#allocation4], 4294967232 }
  0x2b   :  { %59 = vsyncpa [#allocation3], 1 }
  0x2c   :  { %60 = vsyncpa [#allocation4], 1 }

</bundles_post_ra>
